<compile_context>
chip_gen: v5e
topology: v5e:2x2
jax: 0.10.0
libtpu: 0.0.40
codegen_flags: <defaults>
</compile_context>

<pallas_src>
import functools

import jax
import jax.numpy as jnp
from jax.experimental import pallas as pl
from jax.experimental.pallas import tpu as pltpu


def _fold_width(hw):
    """Smallest lane width reachable from `hw` by 128-aligned halving folds."""
    w = hw
    while w > 128 and w % 2 == 0 and (w // 2) % 128 == 0:
        w //= 2
    return w


def _content_kernel(f_ref, v_ref, i_ref, m_ref, o_ref, acc_ref, *,
                    nc_total, blk_nc, steps, width):
    """Gridded reduction producing 4 partial sums per parallel slice.

    o_ref  : SMEM (1, 4) block -> [sum (f-ir)^2, sum |f-v|, sum (d_h r)^2, sum (d_w r)^2]
    m_ref  : VMEM (2, acc_rows, H*W) constant 0/1 TV wrap masks (hoisted)
    acc_ref: VMEM (4, acc_rows, acc_w) f32 resident accumulator
    """
    p = pl.program_id(0)          # parallel split (megacore on v7x)
    k = pl.program_id(1)          # reduction steps over the N*C axis
    hw = f_ref.shape[-1]
    acc_rows = acc_ref.shape[1]
    acc_w = acc_ref.shape[2]

    @pl.when(k == 0)
    def _():
        acc_ref[...] = jnp.zeros_like(acc_ref)

    f = f_ref[...].astype(jnp.float32)
    v = v_ref[...].astype(jnp.float32)
    ir = i_ref[...].astype(jnp.float32)

    def rowsum(x):
        # (blk_nc, hw) -> (acc_rows, hw); layout-preserving sublane-group adds
        # (blk_nc is a multiple of 8 whenever a reshape is actually needed).
        if x.shape[0] == acc_rows:
            return x
        return x.reshape(-1, acc_rows, hw).sum(axis=0)

    def fold(x):
        # (acc_rows, hw) -> (acc_rows, acc_w); 128-lane-aligned halving folds,
        # so every slice is whole-vreg and every add is layout preserving.
        w = x.shape[-1]
        while w > acc_w:
            h = w // 2
            x = x[:, :h] + x[:, h:]
            w = h
        return x

    def accumulate(d_ir, r):
        # TV shift-differences via XLU lane rolls on the flattened H*W axis;
        # the wrap-around columns are removed with the hoisted 0/1 masks,
        # applied AFTER the row-sum (per-column cost, not per-element cost).
        d_h = r - pltpu.roll(r, shift=width, axis=1)   # previous image row
        d_w = r - pltpu.roll(r, shift=1, axis=1)       # previous image column
        acc_ref[0] += fold(rowsum(d_ir * d_ir))
        acc_ref[1] += fold(rowsum(jnp.abs(r)))
        acc_ref[2] += fold(rowsum(d_h * d_h) * m_ref[0])
        acc_ref[3] += fold(rowsum(d_w * d_w) * m_ref[1])

    row0 = (p * steps + k) * blk_nc
    is_tail = row0 + blk_nc > nc_total

    # Fast path: full interior block — no per-element tail masking at all.
    @pl.when(jnp.logical_not(is_tail))
    def _():
        accumulate(f - ir, f - v)

    # Ragged tail (and the clamped overrun step of the 2-way split): padded
    # rows are removed with a select (NOT a multiply — padding may be garbage).
    @pl.when(is_tail)
    def _():
        valid = (jax.lax.broadcasted_iota(jnp.int32, f.shape, 0) + row0) < nc_total
        accumulate(jnp.where(valid, f - ir, 0.0), jnp.where(valid, f - v, 0.0))

    # Epilogue: one cross-lane reduce per term, once per parallel slice.
    @pl.when(k == pl.num_programs(1) - 1)
    def _():
        o_ref[0, 0] = jnp.sum(acc_ref[0])
        o_ref[0, 1] = jnp.sum(acc_ref[1])
        o_ref[0, 2] = jnp.sum(acc_ref[2])
        o_ref[0, 3] = jnp.sum(acc_ref[3])


def loss_g(v, i, f, dv, di, lam=0.5, eta_vis=1.0, eta_ir=1.2, eta_tv=1.2):
    N, C, H, W = f.shape
    NC = N * C
    HW = H * W

    # NCHW -> (N*C, H*W): contiguous, zero-copy view; full 128-lane utilization.
    f2 = f.reshape(NC, HW)
    v2 = v.reshape(NC, HW)
    i2 = i.reshape(NC, HW)
    itemsize = f.dtype.itemsize

    # ---- block sizing: ~2 MiB per input block in the NATIVE dtype (bf16
    # inputs carry 2x elements per DMA step); rows a multiple of 8 so the
    # in-kernel sublane-group reduction stays layout preserving. ----
    target_block_bytes = 2 * 1024 * 1024
    if NC < 8:
        blk_nc = NC
    else:
        blk_nc = max(8, (target_block_bytes // (HW * itemsize)) // 8 * 8)
        blk_nc = min(blk_nc, ((NC + 7) // 8) * 8)
    num_blocks = pl.cdiv(NC, blk_nc)

    # Always use both TensorCores (v7x megacore) when there is >1 block: the
    # odd-block-count overrun step is clamped in the index_map and its
    # contribution is zeroed by the tail mask.
    n_par = 2 if num_blocks >= 2 else 1
    steps = pl.cdiv(num_blocks, n_par)

    acc_rows = blk_nc if blk_nc < 8 else 8
    acc_w = _fold_width(HW)

    # Constant TV wrap masks, hoisted out of the kernel steady state; streamed
    # in once (constant index_map => the resident buffer is not re-fetched).
    j = jnp.arange(HW, dtype=jnp.int32)
    h_mask = (j >= W).astype(jnp.float32)          # valid h-difference: h >= 1
    w_mask = ((j % W) >= 1).astype(jnp.float32)    # valid w-difference: w >= 1
    masks = jnp.broadcast_to(jnp.stack([h_mask, w_mask])[:, None, :],
                             (2, acc_rows, HW))

    if n_par * steps == num_blocks:
        img_idx = lambda p, k: (p * steps + k, 0)
    else:
        img_idx = lambda p, k: (jnp.minimum(p * steps + k, num_blocks - 1), 0)

    img_spec = pl.BlockSpec((blk_nc, HW), img_idx)
    mask_spec = pl.BlockSpec((2, acc_rows, HW), lambda p, k: (0, 0, 0))

    block_bytes = blk_nc * HW * itemsize
    vmem_need = (3 * 2 * block_bytes                 # double-buffered inputs
                 + 2 * 2 * acc_rows * HW * 4         # mask buffers
                 + 6 * blk_nc * HW * 4               # f32 temporaries headroom
                 + 4 * acc_rows * acc_w * 4 + (2 << 20))
    vmem_limit = int(min(max(vmem_need, 32 * 1024 * 1024), 64 * 1024 * 1024))

    kernel = functools.partial(_content_kernel, nc_total=NC, blk_nc=blk_nc,
                               steps=steps, width=W)

    partials = pl.pallas_call(
        kernel,
        out_shape=jax.ShapeDtypeStruct((n_par, 4), jnp.float32),
        grid=(n_par, steps),
        in_specs=[img_spec, img_spec, img_spec, mask_spec],
        out_specs=pl.BlockSpec((1, 4), lambda p, k: (p, 0),
                               memory_space=pltpu.MemorySpace.SMEM),
        scratch_shapes=[pltpu.VMEM((4, acc_rows, acc_w), jnp.float32)],
        compiler_params=pltpu.CompilerParams(
            dimension_semantics=("parallel", "arbitrary"),
            vmem_limit_bytes=vmem_limit),
        cost_estimate=pl.CostEstimate(
            flops=int(12 * NC * HW),
            transcendentals=0,
            bytes_accessed=int(3 * NC * HW * itemsize + 2 * acc_rows * HW * 4)),
    )(f2, v2, i2, masks)

    sums = jnp.sum(partials, axis=0)

    n_el = NC * HW
    loss_ir = sums[0] / n_el                        # nn.MSELoss()(f, i)
    loss_vis = sums[1] / n_el                       # nn.L1Loss()(f, v)
    tv1 = sums[2] / (NC * (H - 1) * W)
    tv2 = sums[3] / (NC * H * (W - 1))
    loss_con = eta_vis * loss_vis + eta_ir * loss_ir + eta_tv * (tv1 + tv2)

    # ---- adversarial loss: MSE(concat(dv[half:], di[half:]), 1) ----
    # Tiny tensors: plain fused JAX, no extra Pallas launch / concatenate.
    idx_m = dv.shape[0] // 2                        # int(len(dv) / 2)
    dv_t = dv[idx_m:].astype(jnp.float32)
    di_t = di[idx_m:].astype(jnp.float32)
    adv_n = dv_t.size + di_t.size
    loss_adv = (jnp.sum((dv_t - 1.0) ** 2) + jnp.sum((di_t - 1.0) ** 2)) / adv_n

    return loss_adv + lam * loss_con


def _reference_loss_g(v, i, f, dv, di, lam=0.5, eta_vis=1.0, eta_ir=1.2, eta_tv=1.2):
    """Pure-JAX reference (mirrors the PyTorch code) for sanity checking."""
    idx_m = dv.shape[0] // 2
    dvi = jnp.concatenate([dv[idx_m:], di[idx_m:]], axis=0)
    loss_adv = jnp.mean((dvi - 1.0) ** 2)

    loss_ir = jnp.mean((f - i) ** 2)
    loss_vis = jnp.mean(jnp.abs(f - v))
    r = f - v
    W_, H_ = r.shape[2], r.shape[3]
    tv1 = jnp.mean((r[:, :, 1:, :] - r[:, :, :H_ - 1, :]) ** 2)
    tv2 = jnp.mean((r[:, :, :, 1:] - r[:, :, :, :W_ - 1]) ** 2)
    loss_con = eta_vis * loss_vis + eta_ir * loss_ir + eta_tv * (tv1 + tv2)
    return loss_adv + lam * loss_con


if __name__ == "__main__":
    key = jax.random.PRNGKey(0)
    kv, ki, kf, kdv, kdi = jax.random.split(key, 5)

    # Small shapes consistent with the fusion-GAN module:
    # single-channel visible / infrared / fused images, NCHW.
    B, C, H, W = 2, 1, 16, 16
    v = jax.random.normal(kv, (B, C, H, W), dtype=jnp.float32)
    i = jax.random.normal(ki, (B, C, H, W), dtype=jnp.float32)
    f = jax.random.normal(kf, (B, C, H, W), dtype=jnp.float32)

    # Patch-discriminator style outputs; batch dim 2*B (real half + fake half).
    dv = jax.nn.sigmoid(jax.random.normal(kdv, (2 * B, 1, 4, 4), dtype=jnp.float32))
    di = jax.nn.sigmoid(jax.random.normal(kdi, (2 * B, 1, 4, 4), dtype=jnp.float32))

    loss_fn = jax.jit(loss_g)
    out = jax.block_until_ready(loss_fn(v, i, f, dv, di))
    ref = jax.block_until_ready(_reference_loss_g(v, i, f, dv, di))
    assert jnp.allclose(out, ref, rtol=1e-5, atol=1e-5), (out, ref)

    print("KERNEL_OK")
</pallas_src>

<mosaic_0001>
module attributes {stable_mosaic.version = 11 : i64} {
  func.func @_content_kernel(%arg0: i32, %arg1: i32, %arg2: memref<2x256xf32, #tpu.memory_space<vmem>>, %arg3: memref<2x256xf32, #tpu.memory_space<vmem>>, %arg4: memref<2x256xf32, #tpu.memory_space<vmem>>, %arg5: memref<2x2x256xf32, #tpu.memory_space<vmem>>, %arg6: memref<1x4xf32, #tpu.memory_space<smem>>, %arg7: memref<4x2x128xf32, #tpu.memory_space<vmem>>) attributes {dimension_semantics = [#tpu.dimension_semantics<parallel>, #tpu.dimension_semantics<arbitrary>], iteration_bounds = array<i64: 1, 1>, scalar_prefetch = 0 : i64, scratch_operands = 1 : i64, tpu.core_type = #tpu.core_type<tc>, window_params = [{transform_indices = @transform_0, window_bounds = array<i64: 2, 256>}, {transform_indices = @transform_1, window_bounds = array<i64: 2, 256>}, {transform_indices = @transform_2, window_bounds = array<i64: 2, 256>}, {pipeline_mode = #tpu.pipeline_mode<synchronous>, transform_indices = @transform_3, window_bounds = array<i64: 2, 2, 256>}, {transform_indices = @transform_4, window_bounds = array<i64: 1, 4>}]} {
    %c0_i32 = arith.constant 0 : i32
    %0 = arith.cmpi eq, %arg1, %c0_i32 : i32
    %1 = arith.extui %0 : i1 to i32
    %c0_i32_0 = arith.constant 0 : i32
    %2 = arith.cmpi ne, %1, %c0_i32_0 : i32
    scf.if %2 {
      %cst = arith.constant 0.000000e+00 : f32
      %19 = vector.broadcast %cst : f32 to vector<4x2x128xf32>
      %c0_12 = arith.constant 0 : index
      %c0_13 = arith.constant 0 : index
      %c0_14 = arith.constant 0 : index
      %20 = vector.load %arg7[%c0_12, %c0_13, %c0_14] : memref<4x2x128xf32, #tpu.memory_space<vmem>>, vector<4x2x128xf32>
      tpu.vector_store %arg7[%c0_12, %c0_13, %c0_14], %19 {strides = array<i32>} : memref<4x2x128xf32, #tpu.memory_space<vmem>>, vector<4x2x128xf32>,
    } else {
    }
    %c0 = arith.constant 0 : index
    %c0_1 = arith.constant 0 : index
    %3 = vector.load %arg2[%c0, %c0_1] : memref<2x256xf32, #tpu.memory_space<vmem>>, vector<2x256xf32>
    %c0_2 = arith.constant 0 : index
    %c0_3 = arith.constant 0 : index
    %4 = vector.load %arg3[%c0_2, %c0_3] : memref<2x256xf32, #tpu.memory_space<vmem>>, vector<2x256xf32>
    %c0_4 = arith.constant 0 : index
    %c0_5 = arith.constant 0 : index
    %5 = vector.load %arg4[%c0_4, %c0_5] : memref<2x256xf32, #tpu.memory_space<vmem>>, vector<2x256xf32>
    %c1_i32 = arith.constant 1 : i32
    %6 = arith.muli %arg0, %c1_i32 : i32
    %7 = arith.addi %6, %arg1 : i32
    %c2_i32 = arith.constant 2 : i32
    %8 = arith.muli %7, %c2_i32 : i32
    %c2_i32_6 = arith.constant 2 : i32
    %9 = arith.addi %8, %c2_i32_6 : i32
    %c2_i32_7 = arith.constant 2 : i32
    %10 = arith.cmpi sgt, %9, %c2_i32_7 : i32
    %true = arith.constant true
    %11 = arith.xori %10, %true : i1
    %12 = arith.extui %11 : i1 to i32
    %c0_i32_8 = arith.constant 0 : i32
    %13 = arith.cmpi ne, %12, %c0_i32_8 : i32
    scf.if %13 {
      %19 = arith.subf %3, %5 : vector<2x256xf32>
      %20 = arith.subf %3, %4 : vector<2x256xf32>
      %c16_i32 = arith.constant 16 : i32
      %21 = tpu.dynamic_rotate %20 by %c16_i32 dim 1 : vector<2x256xf32>, i32 -> vector<2x256xf32>
      %22 = arith.subf %20, %21 : vector<2x256xf32>
      %c1_i32_12 = arith.constant 1 : i32
      %23 = tpu.dynamic_rotate %20 by %c1_i32_12 dim 1 : vector<2x256xf32>, i32 -> vector<2x256xf32>
      %24 = arith.subf %20, %23 : vector<2x256xf32>
      %c0_13 = arith.constant 0 : index
      %c0_14 = arith.constant 0 : index
      %c0_15 = arith.constant 0 : index
      %25 = vector.load %arg7[%c0_13, %c0_14, %c0_15] : memref<4x2x128xf32, #tpu.memory_space<vmem>>, vector<1x2x128xf32>
      %26 = vector.shape_cast %25 : vector<1x2x128xf32> to vector<2x128xf32>
      %27 = arith.mulf %19, %19 : vector<2x256xf32>
      %28 = vector.extract_strided_slice %27 {offsets = [0, 0], sizes = [2, 128], strides = [1, 1]} : vector<2x256xf32> to vector<2x128xf32>
      %29 = vector.extract_strided_slice %27 {offsets = [0, 128], sizes = [2, 128], strides = [1, 1]} : vector<2x256xf32> to vector<2x128xf32>
      %30 = arith.addf %28, %29 : vector<2x128xf32>
      %31 = arith.addf %26, %30 : vector<2x128xf32>
      %c0_16 = arith.constant 0 : index
      %c0_17 = arith.constant 0 : index
      %c0_18 = arith.constant 0 : index
      %32 = vector.load %arg7[%c0_16, %c0_17, %c0_18] : memref<4x2x128xf32, #tpu.memory_space<vmem>>, vector<1x2x128xf32>
      %33 = vector.shape_cast %32 : vector<1x2x128xf32> to vector<2x128xf32>
      %34 = vector.shape_cast %31 : vector<2x128xf32> to vector<1x2x128xf32>
      tpu.vector_store %arg7[%c0_16, %c0_17, %c0_18], %34 {strides = array<i32>} : memref<4x2x128xf32, #tpu.memory_space<vmem>>, vector<1x2x128xf32>,
      %c1 = arith.constant 1 : index
      %c0_19 = arith.constant 0 : index
      %c0_20 = arith.constant 0 : index
      %35 = vector.load %arg7[%c1, %c0_19, %c0_20] : memref<4x2x128xf32, #tpu.memory_space<vmem>>, vector<1x2x128xf32>
      %36 = vector.shape_cast %35 : vector<1x2x128xf32> to vector<2x128xf32>
      %37 = math.absf %20 : vector<2x256xf32>
      %38 = vector.extract_strided_slice %37 {offsets = [0, 0], sizes = [2, 128], strides = [1, 1]} : vector<2x256xf32> to vector<2x128xf32>
      %39 = vector.extract_strided_slice %37 {offsets = [0, 128], sizes = [2, 128], strides = [1, 1]} : vector<2x256xf32> to vector<2x128xf32>
      %40 = arith.addf %38, %39 : vector<2x128xf32>
      %41 = arith.addf %36, %40 : vector<2x128xf32>
      %c1_21 = arith.constant 1 : index
      %c0_22 = arith.constant 0 : index
      %c0_23 = arith.constant 0 : index
      %42 = vector.load %arg7[%c1_21, %c0_22, %c0_23] : memref<4x2x128xf32, #tpu.memory_space<vmem>>, vector<1x2x128xf32>
      %43 = vector.shape_cast %42 : vector<1x2x128xf32> to vector<2x128xf32>
      %44 = vector.shape_cast %41 : vector<2x128xf32> to vector<1x2x128xf32>
      tpu.vector_store %arg7[%c1_21, %c0_22, %c0_23], %44 {strides = array<i32>} : memref<4x2x128xf32, #tpu.memory_space<vmem>>, vector<1x2x128xf32>,
      %c2 = arith.constant 2 : index
      %c0_24 = arith.constant 0 : index
      %c0_25 = arith.constant 0 : index
      %45 = vector.load %arg7[%c2, %c0_24, %c0_25] : memref<4x2x128xf32, #tpu.memory_space<vmem>>, vector<1x2x128xf32>
      %46 = vector.shape_cast %45 : vector<1x2x128xf32> to vector<2x128xf32>
      %47 = arith.mulf %22, %22 : vector<2x256xf32>
      %c0_26 = arith.constant 0 : index
      %c0_27 = arith.constant 0 : index
      %c0_28 = arith.constant 0 : index
      %48 = vector.load %arg5[%c0_26, %c0_27, %c0_28] : memref<2x2x256xf32, #tpu.memory_space<vmem>>, vector<1x2x256xf32>
      %49 = vector.shape_cast %48 : vector<1x2x256xf32> to vector<2x256xf32>
      %50 = arith.mulf %47, %49 : vector<2x256xf32>
      %51 = vector.extract_strided_slice %50 {offsets = [0, 0], sizes = [2, 128], strides = [1, 1]} : vector<2x256xf32> to vector<2x128xf32>
      %52 = vector.extract_strided_slice %50 {offsets = [0, 128], sizes = [2, 128], strides = [1, 1]} : vector<2x256xf32> to vector<2x128xf32>
      %53 = arith.addf %51, %52 : vector<2x128xf32>
      %54 = arith.addf %46, %53 : vector<2x128xf32>
      %c2_29 = arith.constant 2 : index
      %c0_30 = arith.constant 0 : index
      %c0_31 = arith.constant 0 : index
      %55 = vector.load %arg7[%c2_29, %c0_30, %c0_31] : memref<4x2x128xf32, #tpu.memory_space<vmem>>, vector<1x2x128xf32>
      %56 = vector.shape_cast %55 : vector<1x2x128xf32> to vector<2x128xf32>
      %57 = vector.shape_cast %54 : vector<2x128xf32> to vector<1x2x128xf32>
      tpu.vector_store %arg7[%c2_29, %c0_30, %c0_31], %57 {strides = array<i32>} : memref<4x2x128xf32, #tpu.memory_space<vmem>>, vector<1x2x128xf32>,
      %c3 = arith.constant 3 : index
      %c0_32 = arith.constant 0 : index
      %c0_33 = arith.constant 0 : index
      %58 = vector.load %arg7[%c3, %c0_32, %c0_33] : memref<4x2x128xf32, #tpu.memory_space<vmem>>, vector<1x2x128xf32>
      %59 = vector.shape_cast %58 : vector<1x2x128xf32> to vector<2x128xf32>
      %60 = arith.mulf %24, %24 : vector<2x256xf32>
      %c1_34 = arith.constant 1 : index
      %c0_35 = arith.constant 0 : index
      %c0_36 = arith.constant 0 : index
      %61 = vector.load %arg5[%c1_34, %c0_35, %c0_36] : memref<2x2x256xf32, #tpu.memory_space<vmem>>, vector<1x2x256xf32>
      %62 = vector.shape_cast %61 : vector<1x2x256xf32> to vector<2x256xf32>
      %63 = arith.mulf %60, %62 : vector<2x256xf32>
      %64 = vector.extract_strided_slice %63 {offsets = [0, 0], sizes = [2, 128], strides = [1, 1]} : vector<2x256xf32> to vector<2x128xf32>
      %65 = vector.extract_strided_slice %63 {offsets = [0, 128], sizes = [2, 128], strides = [1, 1]} : vector<2x256xf32> to vector<2x128xf32>
      %66 = arith.addf %64, %65 : vector<2x128xf32>
      %67 = arith.addf %59, %66 : vector<2x128xf32>
      %c3_37 = arith.constant 3 : index
      %c0_38 = arith.constant 0 : index
      %c0_39 = arith.constant 0 : index
      %68 = vector.load %arg7[%c3_37, %c0_38, %c0_39] : memref<4x2x128xf32, #tpu.memory_space<vmem>>, vector<1x2x128xf32>
      %69 = vector.shape_cast %68 : vector<1x2x128xf32> to vector<2x128xf32>
      %70 = vector.shape_cast %67 : vector<2x128xf32> to vector<1x2x128xf32>
      tpu.vector_store %arg7[%c3_37, %c0_38, %c0_39], %70 {strides = array<i32>} : memref<4x2x128xf32, #tpu.memory_space<vmem>>, vector<1x2x128xf32>,
    } else {
    }
    %14 = arith.extui %10 : i1 to i32
    %c0_i32_9 = arith.constant 0 : i32
    %15 = arith.cmpi ne, %14, %c0_i32_9 : i32
    scf.if %15 {
      %19 = tpu.iota {dimensions = array<i32: 0>} : vector<2x256xi32>
      %20 = vector.broadcast %8 : i32 to vector<2x256xi32>
      %21 = arith.addi %19, %20 : vector<2x256xi32>
      %c2_i32_12 = arith.constant 2 : i32
      %22 = vector.broadcast %c2_i32_12 : i32 to vector<2x256xi32>
      %23 = arith.cmpi slt, %21, %22 : vector<2x256xi32>
      %24 = arith.subf %3, %5 : vector<2x256xf32>
      %cst = arith.constant 0.000000e+00 : f32
      %25 = vector.broadcast %cst : f32 to vector<2x256xf32>
      %26 = arith.select %23, %24, %25 : vector<2x256xi1>, vector<2x256xf32>
      %27 = arith.subf %3, %4 : vector<2x256xf32>
      %cst_13 = arith.constant 0.000000e+00 : f32
      %28 = vector.broadcast %cst_13 : f32 to vector<2x256xf32>
      %29 = arith.select %23, %27, %28 : vector<2x256xi1>, vector<2x256xf32>
      %c16_i32 = arith.constant 16 : i32
      %30 = tpu.dynamic_rotate %29 by %c16_i32 dim 1 : vector<2x256xf32>, i32 -> vector<2x256xf32>
      %31 = arith.subf %29, %30 : vector<2x256xf32>
      %c1_i32_14 = arith.constant 1 : i32
      %32 = tpu.dynamic_rotate %29 by %c1_i32_14 dim 1 : vector<2x256xf32>, i32 -> vector<2x256xf32>
      %33 = arith.subf %29, %32 : vector<2x256xf32>
      %c0_15 = arith.constant 0 : index
      %c0_16 = arith.constant 0 : index
      %c0_17 = arith.constant 0 : index
      %34 = vector.load %arg7[%c0_15, %c0_16, %c0_17] : memref<4x2x128xf32, #tpu.memory_space<vmem>>, vector<1x2x128xf32>
      %35 = vector.shape_cast %34 : vector<1x2x128xf32> to vector<2x128xf32>
      %36 = arith.mulf %26, %26 : vector<2x256xf32>
      %37 = vector.extract_strided_slice %36 {offsets = [0, 0], sizes = [2, 128], strides = [1, 1]} : vector<2x256xf32> to vector<2x128xf32>
      %38 = vector.extract_strided_slice %36 {offsets = [0, 128], sizes = [2, 128], strides = [1, 1]} : vector<2x256xf32> to vector<2x128xf32>
      %39 = arith.addf %37, %38 : vector<2x128xf32>
      %40 = arith.addf %35, %39 : vector<2x128xf32>
      %c0_18 = arith.constant 0 : index
      %c0_19 = arith.constant 0 : index
      %c0_20 = arith.constant 0 : index
      %41 = vector.load %arg7[%c0_18, %c0_19, %c0_20] : memref<4x2x128xf32, #tpu.memory_space<vmem>>, vector<1x2x128xf32>
      %42 = vector.shape_cast %41 : vector<1x2x128xf32> to vector<2x128xf32>
      %43 = vector.shape_cast %40 : vector<2x128xf32> to vector<1x2x128xf32>
      tpu.vector_store %arg7[%c0_18, %c0_19, %c0_20], %43 {strides = array<i32>} : memref<4x2x128xf32, #tpu.memory_space<vmem>>, vector<1x2x128xf32>,
      %c1 = arith.constant 1 : index
      %c0_21 = arith.constant 0 : index
      %c0_22 = arith.constant 0 : index
      %44 = vector.load %arg7[%c1, %c0_21, %c0_22] : memref<4x2x128xf32, #tpu.memory_space<vmem>>, vector<1x2x128xf32>
      %45 = vector.shape_cast %44 : vector<1x2x128xf32> to vector<2x128xf32>
      %46 = math.absf %29 : vector<2x256xf32>
      %47 = vector.extract_strided_slice %46 {offsets = [0, 0], sizes = [2, 128], strides = [1, 1]} : vector<2x256xf32> to vector<2x128xf32>
      %48 = vector.extract_strided_slice %46 {offsets = [0, 128], sizes = [2, 128], strides = [1, 1]} : vector<2x256xf32> to vector<2x128xf32>
      %49 = arith.addf %47, %48 : vector<2x128xf32>
      %50 = arith.addf %45, %49 : vector<2x128xf32>
      %c1_23 = arith.constant 1 : index
      %c0_24 = arith.constant 0 : index
      %c0_25 = arith.constant 0 : index
      %51 = vector.load %arg7[%c1_23, %c0_24, %c0_25] : memref<4x2x128xf32, #tpu.memory_space<vmem>>, vector<1x2x128xf32>
      %52 = vector.shape_cast %51 : vector<1x2x128xf32> to vector<2x128xf32>
      %53 = vector.shape_cast %50 : vector<2x128xf32> to vector<1x2x128xf32>
      tpu.vector_store %arg7[%c1_23, %c0_24, %c0_25], %53 {strides = array<i32>} : memref<4x2x128xf32, #tpu.memory_space<vmem>>, vector<1x2x128xf32>,
      %c2 = arith.constant 2 : index
      %c0_26 = arith.constant 0 : index
      %c0_27 = arith.constant 0 : index
      %54 = vector.load %arg7[%c2, %c0_26, %c0_27] : memref<4x2x128xf32, #tpu.memory_space<vmem>>, vector<1x2x128xf32>
      %55 = vector.shape_cast %54 : vector<1x2x128xf32> to vector<2x128xf32>
      %56 = arith.mulf %31, %31 : vector<2x256xf32>
      %c0_28 = arith.constant 0 : index
      %c0_29 = arith.constant 0 : index
      %c0_30 = arith.constant 0 : index
      %57 = vector.load %arg5[%c0_28, %c0_29, %c0_30] : memref<2x2x256xf32, #tpu.memory_space<vmem>>, vector<1x2x256xf32>
      %58 = vector.shape_cast %57 : vector<1x2x256xf32> to vector<2x256xf32>
      %59 = arith.mulf %56, %58 : vector<2x256xf32>
      %60 = vector.extract_strided_slice %59 {offsets = [0, 0], sizes = [2, 128], strides = [1, 1]} : vector<2x256xf32> to vector<2x128xf32>
      %61 = vector.extract_strided_slice %59 {offsets = [0, 128], sizes = [2, 128], strides = [1, 1]} : vector<2x256xf32> to vector<2x128xf32>
      %62 = arith.addf %60, %61 : vector<2x128xf32>
      %63 = arith.addf %55, %62 : vector<2x128xf32>
      %c2_31 = arith.constant 2 : index
      %c0_32 = arith.constant 0 : index
      %c0_33 = arith.constant 0 : index
      %64 = vector.load %arg7[%c2_31, %c0_32, %c0_33] : memref<4x2x128xf32, #tpu.memory_space<vmem>>, vector<1x2x128xf32>
      %65 = vector.shape_cast %64 : vector<1x2x128xf32> to vector<2x128xf32>
      %66 = vector.shape_cast %63 : vector<2x128xf32> to vector<1x2x128xf32>
      tpu.vector_store %arg7[%c2_31, %c0_32, %c0_33], %66 {strides = array<i32>} : memref<4x2x128xf32, #tpu.memory_space<vmem>>, vector<1x2x128xf32>,
      %c3 = arith.constant 3 : index
      %c0_34 = arith.constant 0 : index
      %c0_35 = arith.constant 0 : index
      %67 = vector.load %arg7[%c3, %c0_34, %c0_35] : memref<4x2x128xf32, #tpu.memory_space<vmem>>, vector<1x2x128xf32>
      %68 = vector.shape_cast %67 : vector<1x2x128xf32> to vector<2x128xf32>
      %69 = arith.mulf %33, %33 : vector<2x256xf32>
      %c1_36 = arith.constant 1 : index
      %c0_37 = arith.constant 0 : index
      %c0_38 = arith.constant 0 : index
      %70 = vector.load %arg5[%c1_36, %c0_37, %c0_38] : memref<2x2x256xf32, #tpu.memory_space<vmem>>, vector<1x2x256xf32>
      %71 = vector.shape_cast %70 : vector<1x2x256xf32> to vector<2x256xf32>
      %72 = arith.mulf %69, %71 : vector<2x256xf32>
      %73 = vector.extract_strided_slice %72 {offsets = [0, 0], sizes = [2, 128], strides = [1, 1]} : vector<2x256xf32> to vector<2x128xf32>
      %74 = vector.extract_strided_slice %72 {offsets = [0, 128], sizes = [2, 128], strides = [1, 1]} : vector<2x256xf32> to vector<2x128xf32>
      %75 = arith.addf %73, %74 : vector<2x128xf32>
      %76 = arith.addf %68, %75 : vector<2x128xf32>
      %c3_39 = arith.constant 3 : index
      %c0_40 = arith.constant 0 : index
      %c0_41 = arith.constant 0 : index
      %77 = vector.load %arg7[%c3_39, %c0_40, %c0_41] : memref<4x2x128xf32, #tpu.memory_space<vmem>>, vector<1x2x128xf32>
      %78 = vector.shape_cast %77 : vector<1x2x128xf32> to vector<2x128xf32>
      %79 = vector.shape_cast %76 : vector<2x128xf32> to vector<1x2x128xf32>
      tpu.vector_store %arg7[%c3_39, %c0_40, %c0_41], %79 {strides = array<i32>} : memref<4x2x128xf32, #tpu.memory_space<vmem>>, vector<1x2x128xf32>,
    } else {
    }
    %c0_i32_10 = arith.constant 0 : i32
    %16 = arith.cmpi eq, %arg1, %c0_i32_10 : i32
    %17 = arith.extui %16 : i1 to i32
    %c0_i32_11 = arith.constant 0 : i32
    %18 = arith.cmpi ne, %17, %c0_i32_11 : i32
    scf.if %18 {
      %c0_12 = arith.constant 0 : index
      %c0_13 = arith.constant 0 : index
      %c0_14 = arith.constant 0 : index
      %19 = vector.load %arg7[%c0_12, %c0_13, %c0_14] : memref<4x2x128xf32, #tpu.memory_space<vmem>>, vector<1x2x128xf32>
      %20 = vector.shape_cast %19 : vector<1x2x128xf32> to vector<2x128xf32>
      %21 = vector.shape_cast %20 : vector<2x128xf32> to vector<1x2x128xf32>
      %cst = arith.constant dense<0.000000e+00> : vector<1xf32>
      %22 = vector.multi_reduction <add>, %21, %cst [1, 2] : vector<1x2x128xf32> to vector<1xf32>
      %23 = vector.shape_cast %22 : vector<1xf32> to vector<1x1x1xf32>
      %24 = vector.extract %23[0, 0, 0] : f32 from vector<1x1x1xf32>
      %c0_15 = arith.constant 0 : index
      %c0_16 = arith.constant 0 : index
      %25 = memref.load %arg6[%c0_15, %c0_16] : memref<1x4xf32, #tpu.memory_space<smem>>
      memref.store %24, %arg6[%c0_15, %c0_16] : memref<1x4xf32, #tpu.memory_space<smem>>
      %c1 = arith.constant 1 : index
      %c0_17 = arith.constant 0 : index
      %c0_18 = arith.constant 0 : index
      %26 = vector.load %arg7[%c1, %c0_17, %c0_18] : memref<4x2x128xf32, #tpu.memory_space<vmem>>, vector<1x2x128xf32>
      %27 = vector.shape_cast %26 : vector<1x2x128xf32> to vector<2x128xf32>
      %28 = vector.shape_cast %27 : vector<2x128xf32> to vector<1x2x128xf32>
      %cst_19 = arith.constant dense<0.000000e+00> : vector<1xf32>
      %29 = vector.multi_reduction <add>, %28, %cst_19 [1, 2] : vector<1x2x128xf32> to vector<1xf32>
      %30 = vector.shape_cast %29 : vector<1xf32> to vector<1x1x1xf32>
      %31 = vector.extract %30[0, 0, 0] : f32 from vector<1x1x1xf32>
      %c0_20 = arith.constant 0 : index
      %c1_21 = arith.constant 1 : index
      %32 = memref.load %arg6[%c0_20, %c1_21] : memref<1x4xf32, #tpu.memory_space<smem>>
      memref.store %31, %arg6[%c0_20, %c1_21] : memref<1x4xf32, #tpu.memory_space<smem>>
      %c2 = arith.constant 2 : index
      %c0_22 = arith.constant 0 : index
      %c0_23 = arith.constant 0 : index
      %33 = vector.load %arg7[%c2, %c0_22, %c0_23] : memref<4x2x128xf32, #tpu.memory_space<vmem>>, vector<1x2x128xf32>
      %34 = vector.shape_cast %33 : vector<1x2x128xf32> to vector<2x128xf32>
      %35 = vector.shape_cast %34 : vector<2x128xf32> to vector<1x2x128xf32>
      %cst_24 = arith.constant dense<0.000000e+00> : vector<1xf32>
      %36 = vector.multi_reduction <add>, %35, %cst_24 [1, 2] : vector<1x2x128xf32> to vector<1xf32>
      %37 = vector.shape_cast %36 : vector<1xf32> to vector<1x1x1xf32>
      %38 = vector.extract %37[0, 0, 0] : f32 from vector<1x1x1xf32>
      %c0_25 = arith.constant 0 : index
      %c2_26 = arith.constant 2 : index
      %39 = memref.load %arg6[%c0_25, %c2_26] : memref<1x4xf32, #tpu.memory_space<smem>>
      memref.store %38, %arg6[%c0_25, %c2_26] : memref<1x4xf32, #tpu.memory_space<smem>>
      %c3 = arith.constant 3 : index
      %c0_27 = arith.constant 0 : index
      %c0_28 = arith.constant 0 : index
      %40 = vector.load %arg7[%c3, %c0_27, %c0_28] : memref<4x2x128xf32, #tpu.memory_space<vmem>>, vector<1x2x128xf32>
      %41 = vector.shape_cast %40 : vector<1x2x128xf32> to vector<2x128xf32>
      %42 = vector.shape_cast %41 : vector<2x128xf32> to vector<1x2x128xf32>
      %cst_29 = arith.constant dense<0.000000e+00> : vector<1xf32>
      %43 = vector.multi_reduction <add>, %42, %cst_29 [1, 2] : vector<1x2x128xf32> to vector<1xf32>
      %44 = vector.shape_cast %43 : vector<1xf32> to vector<1x1x1xf32>
      %45 = vector.extract %44[0, 0, 0] : f32 from vector<1x1x1xf32>
      %c0_30 = arith.constant 0 : index
      %c3_31 = arith.constant 3 : index
      %46 = memref.load %arg6[%c0_30, %c3_31] : memref<1x4xf32, #tpu.memory_space<smem>>
      memref.store %45, %arg6[%c0_30, %c3_31] : memref<1x4xf32, #tpu.memory_space<smem>>
    } else {
    }
    return
  }
  func.func @transform_0(%arg0: i32, %arg1: i32) -> (i32, i32) {
    %c1_i32 = arith.constant 1 : i32
    %0 = arith.muli %arg0, %c1_i32 : i32
    %1 = arith.addi %0, %arg1 : i32
    %c0_i32 = arith.constant 0 : i32
    %c0_i32_0 = arith.constant 0 : i32
    return %1, %c0_i32 : i32, i32
  }
  func.func @transform_1(%arg0: i32, %arg1: i32) -> (i32, i32) {
    %c1_i32 = arith.constant 1 : i32
    %0 = arith.muli %arg0, %c1_i32 : i32
    %1 = arith.addi %0, %arg1 : i32
    %c0_i32 = arith.constant 0 : i32
    %c0_i32_0 = arith.constant 0 : i32
    return %1, %c0_i32 : i32, i32
  }
  func.func @transform_2(%arg0: i32, %arg1: i32) -> (i32, i32) {
    %c1_i32 = arith.constant 1 : i32
    %0 = arith.muli %arg0, %c1_i32 : i32
    %1 = arith.addi %0, %arg1 : i32
    %c0_i32 = arith.constant 0 : i32
    %c0_i32_0 = arith.constant 0 : i32
    return %1, %c0_i32 : i32, i32
  }
  func.func @transform_3(%arg0: i32, %arg1: i32) -> (i32, i32, i32) {
    %c0_i32 = arith.constant 0 : i32
    %c0_i32_0 = arith.constant 0 : i32
    %c0_i32_1 = arith.constant 0 : i32
    %c0_i32_2 = arith.constant 0 : i32
    return %c0_i32, %c0_i32_0, %c0_i32_1 : i32, i32, i32
  }
  func.func @transform_4(%arg0: i32, %arg1: i32) -> (i32, i32) {
    %c0_i32 = arith.constant 0 : i32
    %c0_i32_0 = arith.constant 0 : i32
    return %arg0, %c0_i32 : i32, i32
  }
}

</mosaic_0001>

<bundles_post_ra>
// kernel: loss_g.1
= control target key start
LH: loop header
LB: loop body
LE: loop exit
PB: predicated region body
PF: predicated region fallthrough
CT: control target
= control target key end

     0   :  { %s451_s0 = inlined_call_operand.vmem [shape: f32[2,256], index: 0, kind: input, shape index: {}]   ;;  %s452_s1 = inlined_call_operand.vmem [shape: f32[2,256], index: 1, kind: input, shape index: {}]   ;;  %s453_s2 = inlined_call_operand.vmem [shape: f32[2,256], index: 2, kind: input, shape index: {}]   ;;  %s454_s3 = inlined_call_operand.vmem [shape: f32[2,2,256], index: 3, kind: input, shape index: {}]   ;;  %s455_s4 = inlined_call_operand.vmem [shape: f32[1,4], index: 4, kind: output, shape index: {}]  }
   0x1   :  { %v86_v0 = vld [vmem:[%s451_s0] sm:$0xf] }
   0x2   :  { %v87_v1 = vld [vmem:[%s452_s1] sm:$0xf] }
   0x3   :  { %v426_v2 = vsub.f32 %v86_v0, %v87_v1 }
   0x4   :  { %9 = vsyncpa [#allocation4], 0  ;;  %s391_s19 = smov 16   ;;  %s392_s20 = smov 1   ;;  %v88_v7 = vld [vmem:[%s453_s2] sm:$0xf]  ;;  %v109_v22 = vlaneseq }
   0x5   :  { %100 = vst [vmem:[#allocation1] ss:$4 sm:$0xff] %v426_v2  ;;  %v149_v8 = vand.u32 2147483647, %v426_v2  ;;  %v393_v9 = vmov 0.0   ;;  %v97_v10 = vsub.f32 %v86_v0, %v88_v7  ;;  %vm117_vm0 = vcmask 1041408  }
   0x6   :  { %82 = vst [vmem:[#allocation2] sm:$0x3] %v393_v9  ;;  %v110_v26 = vand.u32 127, %v109_v22  ;;  %v159_v34 = vld [vmem:[%s454_s3] sm:$0xf]  ;;  %s335_s28 = sshll.u32 %s455_s4, 4  ;;  %s336_s28 = int_to_ptr.vmem [resolvable:$true] %s335_s28 }
   0x7   :  { %v151_v11 = vrot.slane %v149_v8, 2  ;;  %83 = vst [vmem:[#allocation2 + $0x2] sm:$0x3] %v393_v9  ;;  %v140_v12 = vmul.f32 %v97_v10, %v97_v10  ;;  %v363_v46 = vld [vmem:[%s454_s3 + $0x4] sm:$0xf]  ;;  %s394_s30 = smov [#allocation3]  }
   0x8   :  { %84 = vst [vmem:[#allocation2 + $0x4] sm:$0x3] %v393_v9  ;;  %vm111_vm1 = vcmp.lt.s32.totalorder %v110_v26, 16  ;;  %vm130_vm2 = vcmp.lt.s32.totalorder %v110_v26, 1 }
   0x9   :  { %85 = vst [vmem:[#allocation2 + $0x6] sm:$0x3] %v393_v9  ;;  %v142_v13 = vrot.slane %v140_v12, 2  ;;  %v153_v14 = vadd.f32 %v151_v11, %v149_v8 }
   0xb   :  { %v144_v15 = vadd.f32 %v142_v13, %v140_v12 }
   0xc   :  { %v101_v3 = vld.sshfl [vmem:[#allocation1] sm:$0xff pattern:$0x73625140]  ;;  %v102_v4 = vld.sshfl [vmem:[#allocation1 + $0x8] sm:$0xff pattern:$0x73625140] }
   0xd   :  { %105 = vrot.lane.b32.xlu0 %v101_v3, %s391_s19  ;;  %121 = vst [vmem:[#allocation1] ss:$4 sm:$0xff] %v426_v2  ;;  %v139_v16 = vld [vmem:[#allocation2] sm:$0x3] }
   0xe   :  { %v145_v17 = vadd.f32 %v144_v15, %v139_v16  ;;  %v148_v18 = vld [vmem:[#allocation2 + $0x2] sm:$0x3] }
   0xf   :  { %v154_v19 = vadd.f32 %v153_v14, %v148_v18  ;;  %v157_v42 = vld [vmem:[#allocation2 + $0x4] sm:$0x3] }
  0x10   :  { %146 = vst [vmem:[#allocation2] sm:$0x3] %v145_v17  ;;  %v168_v51 = vld [vmem:[#allocation2 + $0x6] sm:$0x3] }
  0x11   :  { %155 = vst [vmem:[#allocation2 + $0x2] sm:$0x3] %v154_v19 }
  0x14   :  { %v122_v5 = vld.sshfl [vmem:[#allocation1] sm:$0xff pattern:$0x73625140]  ;;  %v123_v6 = vld.sshfl [vmem:[#allocation1 + $0x8] sm:$0xff pattern:$0x73625140] }
  0x15   :  { %107 = vrot.lane.b32.xlu0 %v102_v4, %s391_s19  ;;  %126 = vrot.lane.b32.xlu1 %v122_v5, %s392_s20 }
  0x17   :  { %v274_v20 = vld [vmem:[#allocation2] sm:$0x3] }
  0x18   :  { %v276_v21 = vsel %vm117_vm0, %v274_v20, 0.0  ;;  %v289_v24 = vld [vmem:[#allocation2 + $0x2] sm:$0x3] }
  0x19   :  { %277 = vadd.xlane.f32.xlu2 %v276_v21  ;;  %v290_v25 = vsel %vm117_vm0, %v289_v24, 0.0 }
  0x1d   :  { %128 = vrot.lane.b32.xlu1 %v123_v6, %s392_s20 }
  0x21   :  { %291 = vadd.xlane.f32.xlu2 %v290_v25 }
  0x7f   :  { %v106_v23 = vpop.permute.xlu0 %105 }
  0x87   :  { %v108_v27 = vpop.permute.xlu0 %107  ;;  %v127_v28 = vpop.permute.xlu1 %126 }
  0x88   :  { %v112_v29 = vsel %vm111_vm1, %v106_v23, %v108_v27  ;;  %v113_v31 = vsel %vm111_vm1, %v108_v27, %v106_v23 }
  0x89   :  { %v116_v30 = vrot.slane %v112_v29, 6 }
  0x8b   :  { %v118_v32 = vsel %vm117_vm0, %v113_v31, %v116_v30 }
  0x8c   :  { %v120_v33 = vsub.f32 %v426_v2, %v118_v32  ;;  %v278_v58 = vpop.xlane.xlu2 %277 }
  0x8d   :  { %v279_v59 = vrot.slane %v278_v58, 4 }
  0x8e   :  { %v158_v35 = vmul.f32 %v120_v33, %v120_v33 }
  0x8f   :  { %v129_v36 = vpop.permute.xlu1 %128  ;;  %v280_v60 = vadd.f32 %v279_v59, %v278_v58 }
  0x90   :  { %v160_v37 = vmul.f32 %v159_v34, %v158_v35  ;;  %v131_v38 = vsel %vm130_vm2, %v127_v28, %v129_v36  ;;  %v132_v41 = vsel %vm130_vm2, %v129_v36, %v127_v28 }
  0x91   :  { %v135_v39 = vrot.slane %v131_v38, 6  ;;  %v281_v61 = vrot.slane %v280_v60, 2 }
  0x92   :  { %v162_v40 = vrot.slane %v160_v37, 2 }
  0x93   :  { %v136_v43 = vsel %vm117_vm0, %v132_v41, %v135_v39  ;;  %v282_v0 = vadd.f32 %v281_v61, %v280_v60 }
  0x94   :  { %v164_v44 = vadd.f32 %v162_v40, %v160_v37  ;;  %v138_v45 = vsub.f32 %v426_v2, %v136_v43  ;;  %v292_v62 = vpop.xlane.xlu2 %291 }
  0x95   :  { %v293_v63 = vrot.slane %v292_v62, 4  ;;  %v283_v2 = vrot.slane %v282_v0, 1 }
  0x96   :  { %v165_v47 = vadd.f32 %v164_v44, %v157_v42  ;;  %v169_v48 = vmul.f32 %v138_v45, %v138_v45 }
  0x97   :  { %v294_v1 = vadd.f32 %v293_v63, %v292_v62  ;;  %v284_v4 = vadd.f32 %v283_v2, %v282_v0 }
  0x98   :  { %166 = vst [vmem:[#allocation2 + $0x4] sm:$0x3] %v165_v47  ;;  %v172_v49 = vmul.f32 %v363_v46, %v169_v48 }
  0x99   :  { %v295_v3 = vrot.slane %v294_v1, 2  ;;  %365 = vpush %v284_v4 }
  0x9a   :  { %v174_v50 = vrot.slane %v172_v49, 2 }
  0x9b   :  { %v296_v5 = vadd.f32 %v295_v3, %v294_v1 }
  0x9c   :  { %v176_v52 = vadd.f32 %v174_v50, %v172_v49 }
  0x9d   :  { %v297_v6 = vrot.slane %v296_v5, 1 }
  0x9e   :  { %v177_v53 = vadd.f32 %v176_v52, %v168_v51 }
  0x9f   :  { %v303_v54 = vld [vmem:[#allocation2 + $0x4] sm:$0x3]  ;;  %v298_v7 = vadd.f32 %v297_v6, %v296_v5 }
  0xa0   :  { %178 = vst [vmem:[#allocation2 + $0x6] sm:$0x3] %v177_v53  ;;  %v304_v55 = vsel %vm117_vm0, %v303_v54, 0.0 }
  0xa1   :  { %305 = vadd.xlane.f32.xlu0 %v304_v55  ;;  %367 = vpush %v298_v7 }
  0xa7   :  { %v317_v56 = vld [vmem:[#allocation2 + $0x6] sm:$0x3] }
  0xa8   :  { %v318_v57 = vsel %vm117_vm0, %v317_v56, 0.0 }
  0xa9   :  { %319 = vadd.xlane.f32.xlu1 %v318_v57 }
  0xca   :  { %s366_s3 = spop %365 }
  0xcb   :  { %287 = sst [smem:[#allocation3]] %s366_s3 }
  0xd2   :  { %s368_s24 = spop %367 }
  0xd3   :  { %301 = sst [smem:[#allocation3 + $0x1]] %s368_s24 }
 0x114   :  { %v306_v8 = vpop.xlane.xlu0 %305 }
 0x115   :  { %v307_v9 = vrot.slane %v306_v8, 4 }
 0x117   :  { %v308_v10 = vadd.f32 %v307_v9, %v306_v8 }
 0x119   :  { %v309_v11 = vrot.slane %v308_v10, 2 }
 0x11b   :  { %v310_v12 = vadd.f32 %v309_v11, %v308_v10 }
 0x11c   :  { %v320_v13 = vpop.xlane.xlu1 %319 }
 0x11d   :  { %v321_v14 = vrot.slane %v320_v13, 4  ;;  %v311_v15 = vrot.slane %v310_v12, 1 }
 0x11f   :  { %v322_v16 = vadd.f32 %v321_v14, %v320_v13  ;;  %v312_v17 = vadd.f32 %v311_v15, %v310_v12 }
 0x121   :  { %v323_v18 = vrot.slane %v322_v16, 2  ;;  %369 = vpush %v312_v17 }
 0x123   :  { %v324_v19 = vadd.f32 %v323_v18, %v322_v16 }
 0x125   :  { %v325_v20 = vrot.slane %v324_v19, 1 }
 0x127   :  { %v326_v21 = vadd.f32 %v325_v20, %v324_v19 }
 0x129   :  { %371 = vpush %v326_v21 }
 0x152   :  { %s370_s25 = spop %369 }
 0x153   :  { %315 = sst [smem:[#allocation3 + $0x2]] %s370_s25 }
 0x15a   :  { %s372_s29 = spop %371 }
 0x15b   :  { %329 = sst [smem:[#allocation3 + $0x3]] %s372_s29 }
 0x15c   :  { %338 = dma.smem_to_vmem %s394_s30, 16, %s336_s28, [#allocation4]  }
 0x15d   :  { %389 = dma.done.wait [#allocation4], 16  }
 0x15e   :  { %390 = vsyncadd [#allocation4], 4294967280 }
 0x15f   :  { %343 = sfence }
 0x160   :  { %344 = vsyncpa [#allocation4], 1 }

</bundles_post_ra>
